<compile_context>
chip_gen: v7x
topology: tpu7x:2x2x1
jax: 0.10.0
libtpu: 0.0.40
codegen_flags: <defaults>
</compile_context>

<pallas_src>
import functools

import jax
import jax.numpy as jnp
from jax.experimental import pallas as pl
from jax.experimental.pallas import tpu as pltpu


def _round_up(a: int, b: int) -> int:
    return (a + b - 1) // b * b


def _rmsnorm_kernel(x_ref, w_ref, b_ref, o_ref, *, eps: float, hidden: int):
    x = x_ref[...]                                   # (tm, Hp), I/O dtype
    xf = x.astype(jnp.float32)
    # Sum-of-squares reduction in f32 for stability. Padded columns are zero,
    # so dividing by the logical hidden size gives the true mean.
    ms = jnp.sum(xf * xf, axis=-1, keepdims=True) * (1.0 / hidden)
    inv = jax.lax.rsqrt(ms + eps)                    # (tm, 1) f32
    # Final elementwise scale/add in the I/O dtype (bf16 VPU path on v6e/v7x)
    # to avoid a second full-tile f32 temporary. Matches the PyTorch bf16 math.
    # TODO(synk): on v5e (no bf16 VPU) an all-f32 body is equally fast; this
    # path is still correct there, just no bf16 saving.
    inv_x = inv.astype(x.dtype)
    w = w_ref[...].astype(x.dtype)                   # (1, Hp), broadcast
    b = b_ref[...].astype(x.dtype)                   # (1, Hp), broadcast
    o_ref[...] = (x * inv_x * w + b).astype(o_ref.dtype)


def rmsnorm(x: jax.Array, weight: jax.Array, bias: jax.Array,
            eps: float = 1e-5, row_tile: int = 512,
            vmem_limit_bytes: int = 48 * 1024 * 1024) -> jax.Array:
    """RMSNorm over the last axis. x: [..., H]; weight/bias: [H] (bf16)."""
    orig_shape = x.shape
    H = orig_shape[-1]
    x2d = x.reshape(-1, H)
    M = x2d.shape[0]
    dtype = x.dtype

    # ---- lane-dense hidden dim: pad H up to a multiple of 128 --------------
    Hp = max(_round_up(H, 128), 128)
    if Hp != H:
        x2d = jnp.pad(x2d, ((0, 0), (0, Hp - H)))
        w = jnp.pad(weight, (0, Hp - H))
        b = jnp.pad(bias, (0, Hp - H))
    else:
        w, b = weight, bias

    # ---- row tiling: big tiles, capped for VMEM, multiple of 8 sublanes ----
    bytes_per_row = Hp * jnp.dtype(dtype).itemsize
    # Keep one buffered tile around <= 4 MiB: 2 in-bufs + 2 out-bufs + f32
    # temps then stays well inside v7x's 64 MiB VMEM (and v5e/v6e's 128 MiB).
    max_rows_by_vmem = max(8, (4 * 1024 * 1024) // max(bytes_per_row, 1))
    tm = min(row_tile, max_rows_by_vmem, _round_up(M, 8))
    tm = max(8, (tm // 8) * 8)

    # ---- pad rows so the grid divides evenly (no hard assert) --------------
    Mp = _round_up(M, tm)
    if Mp != M:
        x2d = jnp.pad(x2d, ((0, Mp - M), (0, 0)))

    w2d = w.reshape(1, Hp)
    b2d = b.reshape(1, Hp)

    kernel = functools.partial(_rmsnorm_kernel, eps=eps, hidden=H)

    out = pl.pallas_call(
        kernel,
        out_shape=jax.ShapeDtypeStruct((Mp, Hp), dtype),
        grid_spec=pltpu.PrefetchScalarGridSpec(
            num_scalar_prefetch=0,
            grid=(Mp // tm,),
            in_specs=[
                pl.BlockSpec((tm, Hp), lambda i: (i, 0)),   # x rows
                pl.BlockSpec((1, Hp), lambda i: (0, 0)),    # weight (stays resident)
                pl.BlockSpec((1, Hp), lambda i: (0, 0)),    # bias   (stays resident)
            ],
            out_specs=pl.BlockSpec((tm, Hp), lambda i: (i, 0)),
        ),
        compiler_params=pltpu.CompilerParams(
            dimension_semantics=("parallel",),
            vmem_limit_bytes=vmem_limit_bytes,
        ),
    )(x2d, w2d, b2d)

    out = out[:M, :H]
    return out.reshape(orig_shape)


def rmsnorm_ref(x, weight, bias, eps=1e-5):
    xf = x.astype(jnp.float32)
    ms = jnp.mean(xf * xf, axis=-1, keepdims=True)
    y = xf * jax.lax.rsqrt(ms + eps) * weight.astype(jnp.float32) \
        + bias.astype(jnp.float32)
    return y.astype(x.dtype)


if __name__ == "__main__":
    key = jax.random.PRNGKey(0)
    batch, seq, hidden = 2, 8, 32

    # Deterministic parameter init per nn.Module.__init__:
    # weight = ones(hidden, bf16), bias = zeros(hidden, bf16).
    weight = jnp.ones((hidden,), dtype=jnp.bfloat16)
    bias = jnp.zeros((hidden,), dtype=jnp.bfloat16)

    x = jax.random.normal(key, (batch, seq, hidden), dtype=jnp.float32)
    x = x.astype(jnp.bfloat16)

    y = rmsnorm(x, weight, bias, eps=1e-5)
    y = jax.block_until_ready(y)

    y_ref = rmsnorm_ref(x, weight, bias, eps=1e-5)
    assert y.shape == x.shape and y.dtype == x.dtype
    err = jnp.max(jnp.abs(y.astype(jnp.float32) - y_ref.astype(jnp.float32)))
    assert float(err) < 1e-1, f"max abs err too large: {err}"

    print("KERNEL_OK")
</pallas_src>

<mosaic_0001>
module attributes {stable_mosaic.version = 11 : i64} {
  func.func @_rmsnorm_kernel(%arg0: i32, %arg1: memref<16x128xbf16, #tpu.memory_space<vmem>>, %arg2: memref<1x128xbf16, #tpu.memory_space<vmem>>, %arg3: memref<1x128xbf16, #tpu.memory_space<vmem>>, %arg4: memref<16x128xbf16, #tpu.memory_space<vmem>>) attributes {dimension_semantics = [#tpu.dimension_semantics<parallel>], iteration_bounds = array<i64: 1>, scalar_prefetch = 0 : i64, scratch_operands = 0 : i64, tpu.core_type = #tpu.core_type<tc>, window_params = [{transform_indices = @transform_0, window_bounds = array<i64: 16, 128>}, {pipeline_mode = #tpu.pipeline_mode<synchronous>, transform_indices = @transform_1, window_bounds = array<i64: 1, 128>}, {pipeline_mode = #tpu.pipeline_mode<synchronous>, transform_indices = @transform_2, window_bounds = array<i64: 1, 128>}, {transform_indices = @transform_3, window_bounds = array<i64: 16, 128>}]} {
    %c0 = arith.constant 0 : index
    %c0_0 = arith.constant 0 : index
    %0 = vector.load %arg1[%c0, %c0_0] : memref<16x128xbf16, #tpu.memory_space<vmem>>, vector<16x128xbf16>
    %1 = arith.extf %0 : vector<16x128xbf16> to vector<16x128xf32>
    %2 = arith.mulf %1, %1 : vector<16x128xf32>
    %cst = arith.constant dense<0.000000e+00> : vector<16xf32>
    %3 = vector.multi_reduction <add>, %2, %cst [1] : vector<16x128xf32> to vector<16xf32>
    %4 = vector.shape_cast %3 : vector<16xf32> to vector<16x1xf32>
    %cst_1 = arith.constant 3.125000e-02 : f32
    %5 = vector.broadcast %cst_1 : f32 to vector<16x1xf32>
    %6 = arith.mulf %4, %5 : vector<16x1xf32>
    %cst_2 = arith.constant 9.99999974E-6 : f32
    %7 = vector.broadcast %cst_2 : f32 to vector<16x1xf32>
    %8 = arith.addf %6, %7 : vector<16x1xf32>
    %9 = math.rsqrt %8 : vector<16x1xf32>
    %10 = arith.truncf %9 : vector<16x1xf32> to vector<16x1xbf16>
    %c0_3 = arith.constant 0 : index
    %c0_4 = arith.constant 0 : index
    %11 = vector.load %arg2[%c0_3, %c0_4] : memref<1x128xbf16, #tpu.memory_space<vmem>>, vector<1x128xbf16>
    %c0_5 = arith.constant 0 : index
    %c0_6 = arith.constant 0 : index
    %12 = vector.load %arg3[%c0_5, %c0_6] : memref<1x128xbf16, #tpu.memory_space<vmem>>, vector<1x128xbf16>
    %13 = vector.broadcast %10 : vector<16x1xbf16> to vector<16x128xbf16>
    %14 = arith.mulf %0, %13 : vector<16x128xbf16>
    %15 = vector.broadcast %11 : vector<1x128xbf16> to vector<16x128xbf16>
    %16 = arith.mulf %14, %15 : vector<16x128xbf16>
    %17 = vector.broadcast %12 : vector<1x128xbf16> to vector<16x128xbf16>
    %18 = arith.addf %16, %17 : vector<16x128xbf16>
    %c0_7 = arith.constant 0 : index
    %c0_8 = arith.constant 0 : index
    %19 = vector.load %arg4[%c0_7, %c0_8] : memref<16x128xbf16, #tpu.memory_space<vmem>>, vector<16x128xbf16>
    tpu.vector_store %arg4[%c0_7, %c0_8], %18 {strides = array<i32>} : memref<16x128xbf16, #tpu.memory_space<vmem>>, vector<16x128xbf16>,
    return
  }
  func.func @transform_0(%arg0: i32) -> (i32, i32) {
    %c0_i32 = arith.constant 0 : i32
    %c0_i32_0 = arith.constant 0 : i32
    return %arg0, %c0_i32 : i32, i32
  }
  func.func @transform_1(%arg0: i32) -> (i32, i32) {
    %c0_i32 = arith.constant 0 : i32
    %c0_i32_0 = arith.constant 0 : i32
    %c0_i32_1 = arith.constant 0 : i32
    return %c0_i32, %c0_i32_0 : i32, i32
  }
  func.func @transform_2(%arg0: i32) -> (i32, i32) {
    %c0_i32 = arith.constant 0 : i32
    %c0_i32_0 = arith.constant 0 : i32
    %c0_i32_1 = arith.constant 0 : i32
    return %c0_i32, %c0_i32_0 : i32, i32
  }
  func.func @transform_3(%arg0: i32) -> (i32, i32) {
    %c0_i32 = arith.constant 0 : i32
    %c0_i32_0 = arith.constant 0 : i32
    return %arg0, %c0_i32 : i32, i32
  }
}

</mosaic_0001>

<bundles_post_ra>
// kernel: tpu_custom_call.1
= control target key start
LH: loop header
LB: loop body
LE: loop exit
PB: predicated region body
PF: predicated region fallthrough
CT: control target
= control target key end

     0   :  { %8 = vsyncpa [#allocation3], 0  ;;  %s240_s0 = inlined_call_operand.hbm [shape: bf16[16,128], index: 0, kind: input, shape index: {}]   ;;  %s241_s1 = inlined_call_operand.vmem [shape: bf16[1,128], index: 1, kind: input, shape index: {}]   ;;  %s242_s2 = inlined_call_operand.vmem [shape: bf16[1,128], index: 2, kind: input, shape index: {}]   ;;  %s243_s3 = inlined_call_operand.hbm [shape: bf16[16,128], index: 3, kind: output, shape index: {}]  }
   0x1   :  { %9 = vsyncpa [#allocation4], 0  ;;  %s178_s12 = smov [#allocation2]   ;;  %s130_s16 = scalar_lea.hbm %s240_s0, 128 }
   0x2   :  { %s15_s13 = sshll.u32 %s178_s12, 4  ;;  %p131_p0 = scmp.ne.s32.totalorder %s240_s0, %s130_s16  ;;  %s16_s13 = int_to_ptr.vmem [resolvable:$true] %s15_s13 }
   0x3   :  { %p134_p1 = scmp.lt.u32.totalorder %s130_s16, %s240_s0 }
   0x5   :  { %p136_p2 = pnand %p134_p1, %p131_p0 }
   0x7   :  { %139 = shalt.err (!%p136_p2)
}
   0x8   :  { %s140_s21 = scalar_lea.vmem %s16_s13, 128  ;;  %p145_p4 = scmp.lt.s32.totalorder %s16_s13, %s16_s13 }
   0x9   :  { %p141_p3 = scmp.ne.s32.totalorder %s16_s13, %s140_s21  ;;  %p146_p5 = scmp.lt.s32.totalorder %s140_s21, %s140_s21 }
   0xb   :  { %p147_p6 = por %p146_p5, %p145_p4 }
   0xd   :  { %p148_p7 = pnand %p147_p6, %p141_p3 }
   0xf   :  { %151 = shalt.err (!%p148_p7)
}
  0x10   :  { %s179_s22 = smov 64   ;;  %s180_s23 = smov 4  }
  0x11   :  { %21 = dma.hbm_to_vmem [thread:$0]  %s240_s0, 128, %s16_s13, [#allocation3], %s179_s22, %s179_s22, %s180_s23  }
  0x12   :  { %174 = dma.done.wait [#allocation3], 128  }
  0x13   :  { %175 = vsyncadd [#allocation3], 4294967168  ;;  %v29_v0 = vld [vmem:[#allocation2] sm:$0xf]  ;;  %v30_v1 = vld [vmem:[#allocation2 + $0x4] sm:$0xf]  ;;  %v52_v11 = vlaneseq }
  0x14   :  { %v31_v2 = vunpack.c.l.bf16 %v29_v0  ;;  %v32_v3 = vunpack.c.l.bf16 %v30_v1  ;;  %v181_v13 = vmov 839922192   ;;  %v182_v16 = vmov 1985246804   ;;  %v46_v18 = vld [vmem:[%s241_s1] sm:$0x1] }
  0x15   :  { %v50_v14 = vunpack.c.l.s4 %v181_v13  ;;  %v53_v15 = vshrl.u32 %v52_v11, 7  ;;  %v57_v17 = vunpack.c.l.s4 %v182_v16  ;;  %v47_v19 = vld [vmem:[%s242_s2] sm:$0x1]  ;;  %v68_v22 = vpack.i.b16 %v46_v18, %v46_v18  ;;  %s183_s1 = smov [#allocation5]  }
  0x16   :  { %v33_v4 = vmul.f32 %v31_v2, %v31_v2  ;;  %v34_v5 = vmul.f32 %v32_v3, %v32_v3  ;;  %v81_v24 = vpack.i.b16 %v47_v19, %v47_v19  ;;  %s100_s2 = sshll.u32 %s183_s1, 4  ;;  %s101_s2 = int_to_ptr.vmem [resolvable:$true] %s100_s2 }
  0x17   :  { %v51_v20 = vunpack.c.0.s8 %v50_v14  ;;  %v58_v21 = vunpack.c.0.s8 %v57_v17  ;;  %v72_v23 = vsub.s32 0, %v53_v15  ;;  %s152_s29 = scalar_lea.vmem %s101_s2, 128  ;;  %p157_p9 = scmp.lt.s32.totalorder %s101_s2, %s101_s2 }
  0x18   :  { %35 = vadd.xlane.f32.xlu0 %v33_v4  ;;  %p153_p8 = scmp.ne.s32.totalorder %s101_s2, %s152_s29  ;;  %p158_p10 = scmp.lt.s32.totalorder %s152_s29, %s152_s29 }
  0x19   :  { %v54_v26 = vsub.s32 %v51_v20, %v53_v15  ;;  %v61_v27 = vsub.s32 %v58_v21, %v53_v15  ;;  %v73_v28 = vrot.slane %v68_v22, %v72_v23  ;;  %v86_v31 = vrot.slane %v81_v24, %v72_v23 }
  0x1a   :  { %p159_p11 = por %p158_p10, %p157_p9 }
  0x1b   :  { %v112_v34 = vcombine.low %v73_v28, %v73_v28  ;;  %v113_v37 = vcombine.low %v86_v31, %v86_v31 }
  0x1c   :  { %37 = vadd.xlane.f32.xlu0 %v34_v5  ;;  %p160_p12 = pnand %p159_p11, %p153_p8 }
  0xa5   :  { %v36_v6 = vpop.xlane.xlu0 %35 }
  0xa6   :  { %v39_v7 = vmul.f32 0.03125, %v36_v6 }
  0xa8   :  { %v41_v8 = vadd.f32 1e-05, %v39_v7 }
  0xa9   :  { %v38_v9 = vpop.xlane.xlu0 %37 }
  0xaa   :  { %v40_v10 = vmul.f32 0.03125, %v38_v9  ;;  %126 = vrsqrt.f32 %v41_v8 }
  0xac   :  { %v42_v12 = vadd.f32 1e-05, %v40_v10 }
  0xae   :  { %128 = vrsqrt.f32 %v42_v12 }
  0xb4   :  { %v127_v25 = vpop.eup %126 }
  0xb8   :  { %v129_v29 = vpop.eup %128 }
  0xb9   :  { %v45_v30 = vpack.c.bf16 %v129_v29, %v127_v25 }
  0xbb   :  { %v55_v32 = vrot.slane %v45_v30, %v54_v26  ;;  %v62_v33 = vrot.slane %v45_v30, %v61_v27 }
  0xbd   :  { %v65_v35 = vmul.bf16 %v55_v32, %v29_v0  ;;  %v66_v36 = vmul.bf16 %v62_v33, %v30_v1 }
  0xbf   :  { %v78_v38 = vmul.bf16 %v112_v34, %v65_v35  ;;  %v79_v39 = vmul.bf16 %v112_v34, %v66_v36 }
  0xc1   :  { %v91_v40 = vadd.bf16 %v113_v37, %v78_v38  ;;  %v92_v41 = vadd.bf16 %v113_v37, %v79_v39 }
  0xc3   :  { %v119_v42 = vcombine.low %v91_v40, %v92_v41 }
  0xc5   :  { %118 = vst [vmem:[#allocation5] sm:$0xff] %v119_v42  }
  0xc6   :  { %163 = shalt.err (!%p160_p12)
}
  0xc7   :  { %s164_s5 = scalar_lea.hbm %s243_s3, 128 }
  0xc8   :  { %p165_p13 = scmp.ne.s32.totalorder %s243_s3, %s164_s5  ;;  %p168_p0 = scmp.lt.u32.totalorder %s164_s5, %s243_s3 }
  0xca   :  { %p170_p1 = pnand %p168_p0, %p165_p13 }
  0xcc   :  { %173 = shalt.err (!%p170_p1)
}
  0xcd   :  { %106 = dma.vmem_to_hbm [thread:$0]  %s101_s2, 128, %s243_s3, [#allocation4], %s179_s22, %s179_s22, %s180_s23  }
  0xce   :  { %176 = dma.done.wait [#allocation4], 128  }
  0xcf   :  { %177 = vsyncadd [#allocation4], 4294967168 }
  0xd0   :  { %110 = vsyncpa [#allocation3], 1 }
  0xd1   :  { %111 = vsyncpa [#allocation4], 1 }

</bundles_post_ra>
